<compile_context>
chip_gen: v7x
topology: tpu7x:2x2x1
jax: 0.10.0
libtpu: 0.0.40
codegen_flags: <defaults>
</compile_context>

<pallas_src>
import numpy as np
import jax
import jax.numpy as jnp
from jax.experimental import pallas as pl
from jax.experimental.pallas import tpu as pltpu


# ----------------------------------------------------------------------------------
# Kernel
# ----------------------------------------------------------------------------------
def _make_st_gcn_kernel(*, B, Cin, Cout, K, kt, V, Tt, T):
    pad = (kt - 1) // 2
    TtV = Tt * V
    Lh = (Tt + 2 * pad) * V            # halo tile width in lanes

    def kernel(x_ref, bd_ref, wg_ref, sh1_ref, wt_ref, wr_ref, cf_ref, out_ref):
        wg = wg_ref[...]                               # (Cout, K*Cin)
        cdt = wg.dtype                                 # MXU operand dtype (bf16 or f32)
        xf = x_ref[...]                                # (B*Cin, Lh), already in cdt

        # ---- stage 1: graph conv (adjacency per partition, fused channel matmul) ----
        # adjacency: block-diagonal I_{Tt+2*pad} (x) A[k] applied on the lane axis,
        # batched over B samples * Cin channels (MXU M-dim = B*Cin).
        xa_parts = []
        for k in range(K):                             # K is small & static
            xa_k = jnp.dot(xf, bd_ref[k], preferred_element_type=jnp.float32)
            xa_parts.append(xa_k.reshape(B, Cin, Lh))
        xa = jnp.concatenate(xa_parts, axis=1).astype(cdt)        # (B, K*Cin, Lh)

        # one fused contraction over K*Cin per sample (BN1 scale folded into wg)
        wg_b = jnp.broadcast_to(wg, (B, Cout, K * Cin))
        g = jnp.einsum('bod,bdl->bol', wg_b, xa,
                       preferred_element_type=jnp.float32)        # (B, Cout, Lh)
        g = g + sh1_ref[...][None]                     # BN1 shift + gcn bias through A
        h = jnp.maximum(g, 0.0)

        # zero h at halo lanes whose global timestep falls outside [0, T)
        jt = pl.program_id(1)
        lane = jax.lax.broadcasted_iota(jnp.int32, (B, Cout, Lh), 2)
        lo = pad * V - jt * TtV                        # first valid lane (may be <= 0)
        hi = (T + pad) * V - jt * TtV                  # one past the last valid lane
        h = jnp.where((lane >= lo) & (lane < hi), h, 0.0)

        # ---- stage 2: temporal conv (kt,1), fused over all taps ----------------------
        # tap dt for central output lane l reads h at lane l + dt*V inside the halo tile
        taps = [h[:, :, dt * V: dt * V + TtV] for dt in range(kt)]
        hcat = jnp.concatenate(taps, axis=1).astype(cdt)          # (B, kt*Cout, TtV)
        wt_b = jnp.broadcast_to(wt_ref[...], (B, Cout, kt * Cout))
        acc = jnp.einsum('bod,bdl->bol', wt_b, hcat,
                         preferred_element_type=jnp.float32)      # (B, Cout, TtV)

        # ---- residual 1x1 conv + all folded additive constants + final ReLU ---------
        xc = xf[:, pad * V: pad * V + TtV].reshape(B, Cin, TtV)   # central x slice
        wr_b = jnp.broadcast_to(wr_ref[...], (B, Cout, Cin))
        res = jnp.einsum('bod,bdl->bol', wr_b, xc,
                         preferred_element_type=jnp.float32)

        out = jnp.maximum(acc + res + cf_ref[...][None], 0.0)     # (B, Cout, TtV)
        out_ref[...] = out.reshape(B * Cout, TtV).astype(out_ref.dtype)

    return kernel


# ----------------------------------------------------------------------------------
# One-time parameter folding (hoisted out of the per-call path)
# ----------------------------------------------------------------------------------
def fold_bn(gamma, beta, mean, var, eps=1e-5):
    scale = gamma / jnp.sqrt(var + eps)
    shift = beta - mean * scale
    return scale, shift


def fold_st_gcn_params(A, params, *, t_tile, use_bf16=False):
    """Precompute (ONCE) all folded / concatenated operands consumed by the kernel."""
    (Wg, bg, s1, sh1, Wt, bt, s2, sh2, Wr, br, sr, shr) = params
    K, V, _ = A.shape
    _, Cout, Cin = Wg.shape
    kt = Wt.shape[0]
    pad = (kt - 1) // 2
    Tt = t_tile
    TtV = Tt * V
    nH = Tt + 2 * pad
    cdt = jnp.bfloat16 if use_bf16 else jnp.float32

    # per-tile block-diagonal adjacency operator I_{Tt+2*pad} (x) A[k]
    eye = jnp.eye(nH, dtype=jnp.float32)
    bd = jax.vmap(lambda Ak: jnp.kron(eye, Ak))(A)                    # (K, nH*V, nH*V)

    # gcn bias propagated through A, tiled over the halo-tile lanes (t*V + v order)
    colsum = jnp.sum(A, axis=1)                                       # (K, V)
    gcn_bias = jnp.einsum('ko,kw->ow', bg, colsum)                    # (Cout, V)
    shift1 = s1[:, None] * jnp.tile(gcn_bias, (1, nH)) + sh1[:, None]  # (Cout, nH*V)

    # BN scales folded into the weights; K / kt axes concatenated for fused matmuls
    Wg_eff = s1[None, :, None] * Wg                                   # (K, Cout, Cin)
    wg_cat = jnp.transpose(Wg_eff, (1, 0, 2)).reshape(Cout, K * Cin)
    Wt_eff = s2[None, :, None] * Wt                                   # (kt, Cout, Cout)
    wt_cat = jnp.transpose(Wt_eff, (1, 0, 2)).reshape(Cout, kt * Cout)
    wr_eff = sr[:, None] * Wr                                         # (Cout, Cin)

    # all additive constants, pre-broadcast lane-dense (no (Cout,1) padded block)
    c2 = s2 * bt + sh2 + sr * br + shr                                # (Cout,)
    cfin = jnp.tile(c2[:, None], (1, TtV))                            # (Cout, TtV)

    return (bd.astype(cdt), wg_cat.astype(cdt), shift1.astype(jnp.float32),
            wt_cat.astype(cdt), wr_eff.astype(cdt), cfin.astype(jnp.float32))


# ----------------------------------------------------------------------------------
# Forward wrapper
# ----------------------------------------------------------------------------------
def st_gcn_block_forward(x, A, folded, batch_block):
    """x: (N, Cin, T, V) f32, A: (K, V, V) f32 (passed through unchanged).
    `folded` comes from fold_st_gcn_params (precomputed once)."""
    bd, wg_cat, shift1, wt_cat, wr_eff, cfin = folded
    N, Cin, T, V = x.shape
    K = bd.shape[0]
    Cout = wg_cat.shape[0]
    kt = wt_cat.shape[1] // Cout
    pad = (kt - 1) // 2
    TtV = cfin.shape[1]
    Tt = TtV // V
    Lh = shift1.shape[1]
    assert Lh == (Tt + 2 * pad) * V
    if T % Tt != 0:
        raise ValueError(f"T={T} must be a multiple of the temporal tile Tt={Tt}")
    nT = T // Tt
    if TtV % 128 != 0 and nT != 1:
        raise ValueError("temporal tile must give a lane-dense (multiple-of-128) output block")

    B = batch_block
    NB = (N + B - 1) // B
    Np = NB * B
    cdt = bd.dtype                                  # compute dtype for MXU operands

    # pad the batch to a multiple of B (extra samples sliced off at the end)
    xg = x
    if Np != N:
        xg = jnp.concatenate([xg, jnp.zeros((Np - N,) + x.shape[1:], x.dtype)], axis=0)
    # lane-dense (B*Cin, T*V) grouping -- free reshape of NCHW
    xg = xg.reshape(NB, B * Cin, T * V)
    # overlapping temporal tiles with a pad-timestep halo on each side
    xg = jnp.pad(xg, ((0, 0), (0, 0), (pad * V, pad * V)))
    x_tiles = jnp.stack([xg[:, :, j * TtV: j * TtV + Lh] for j in range(nT)], axis=1)
    x_tiles = x_tiles.astype(cdt)                   # (NB, nT, B*Cin, Lh)

    kernel = _make_st_gcn_kernel(B=B, Cin=Cin, Cout=Cout, K=K, kt=kt, V=V, Tt=Tt, T=T)

    out_grp = pl.pallas_call(
        kernel,
        out_shape=jax.ShapeDtypeStruct((NB, B * Cout, T * V), jnp.float32),
        grid_spec=pltpu.PrefetchScalarGridSpec(
            num_scalar_prefetch=0,
            grid=(NB, nT),
            in_specs=[
                pl.BlockSpec((None, None, B * Cin, Lh), lambda nb, jt: (nb, jt, 0, 0)),  # x tile
                pl.BlockSpec((K, Lh, Lh),               lambda nb, jt: (0, 0, 0)),       # adjacency
                pl.BlockSpec((Cout, K * Cin),           lambda nb, jt: (0, 0)),          # gcn weights
                pl.BlockSpec((Cout, Lh),                lambda nb, jt: (0, 0)),          # BN1 shift
                pl.BlockSpec((Cout, kt * Cout),         lambda nb, jt: (0, 0)),          # temporal taps
                pl.BlockSpec((Cout, Cin),               lambda nb, jt: (0, 0)),          # residual 1x1
                pl.BlockSpec((Cout, TtV),               lambda nb, jt: (0, 0)),          # constants
            ],
            out_specs=pl.BlockSpec((None, B * Cout, TtV), lambda nb, jt: (nb, 0, jt)),
        ),
        compiler_params=pltpu.CompilerParams(
            dimension_semantics=("parallel", "parallel"),
            vmem_limit_bytes=32 * 1024 * 1024,
        ),
    )(x_tiles, bd, wg_cat, shift1, wt_cat, wr_eff, cfin)

    out = out_grp.reshape(Np, Cout, T, V)[:N]
    return out, A


# ----------------------------------------------------------------------------------
# Pure-JAX reference mirroring the PyTorch module (eval mode)
# ----------------------------------------------------------------------------------
def reference_forward(x, A, params):
    (Wg, bg, s1, sh1, Wt, bt, s2, sh2, Wr, br, sr, shr) = params
    N, Cin, T, V = x.shape
    K = A.shape[0]
    Cout = Wg.shape[1]
    kt = Wt.shape[0]
    pad = (kt - 1) // 2
    hp = jax.lax.Precision.HIGHEST

    y = jnp.einsum('koc,nctv->nkotv', Wg, x, precision=hp) + bg[None, :, :, None, None]
    g = jnp.einsum('nkotv,kvw->notw', y, A, precision=hp)
    h = jnp.maximum(g * s1[None, :, None, None] + sh1[None, :, None, None], 0.0)
    hpad = jnp.pad(h, ((0, 0), (0, 0), (pad, pad), (0, 0)))
    tout = sum(jnp.einsum('oc,nctv->notv', Wt[dt], hpad[:, :, dt:dt + T, :], precision=hp)
               for dt in range(kt))
    tout = tout + bt[None, :, None, None]
    tout = tout * s2[None, :, None, None] + sh2[None, :, None, None]
    r = jnp.einsum('oc,nctv->notv', Wr, x, precision=hp) + br[None, :, None, None]
    r = r * sr[None, :, None, None] + shr[None, :, None, None]
    return jnp.maximum(tout + r, 0.0), A


# ----------------------------------------------------------------------------------
if __name__ == "__main__":
    # small shapes: batch=4, in_channels=4, out_channels=8, T=16, V=16,
    # kernel_size=(kt=3, K=2), stride=1, residual=True (conv residual path).
    # Tt=8 -> 2 temporal tiles of 128 lanes; batch_block=2 -> 2 sample blocks.
    N, Cin, Cout, T, V, K, kt = 4, 4, 8, 16, 16, 2, 3
    T_TILE, BATCH_BLOCK = 8, 2

    key = jax.random.PRNGKey(0)
    keys = jax.random.split(key, 20)

    x = jax.random.normal(keys[0], (N, Cin, T, V), jnp.float32)
    A = jax.random.uniform(keys[1], (K, V, V), jnp.float32) / V

    Wg = jax.random.normal(keys[2], (K, Cout, Cin), jnp.float32) / np.sqrt(Cin)
    bg = jax.random.normal(keys[3], (K, Cout), jnp.float32) * 0.1
    Wt = jax.random.normal(keys[4], (kt, Cout, Cout), jnp.float32) / np.sqrt(Cout * kt)
    bt = jax.random.normal(keys[5], (Cout,), jnp.float32) * 0.1
    Wr = jax.random.normal(keys[6], (Cout, Cin), jnp.float32) / np.sqrt(Cin)
    br = jax.random.normal(keys[7], (Cout,), jnp.float32) * 0.1

    def bn_params(k0, k1, k2, k3):
        gamma = jax.random.uniform(keys[k0], (Cout,), jnp.float32, 0.5, 1.5)
        beta = jax.random.normal(keys[k1], (Cout,), jnp.float32) * 0.1
        mean = jax.random.normal(keys[k2], (Cout,), jnp.float32) * 0.1
        var = jax.random.uniform(keys[k3], (Cout,), jnp.float32, 0.5, 1.5)
        return fold_bn(gamma, beta, mean, var)

    s1, sh1 = bn_params(8, 9, 10, 11)     # tcn BN #1
    s2, sh2 = bn_params(12, 13, 14, 15)   # tcn BN #2
    sr, shr = bn_params(16, 17, 18, 19)   # residual BN

    params = (Wg, bg, s1, sh1, Wt, bt, s2, sh2, Wr, br, sr, shr)

    # parameter folding is done ONCE, outside the per-call path
    folded_f32 = fold_st_gcn_params(A, params, t_tile=T_TILE, use_bf16=False)
    folded_bf16 = fold_st_gcn_params(A, params, t_tile=T_TILE, use_bf16=True)

    fwd = jax.jit(st_gcn_block_forward, static_argnums=(3,))

    ref, _ = reference_forward(x, A, params)

    # f32 path: exact rearrangement of the reference math
    out_f32, A_out = fwd(x, A, folded_f32, BATCH_BLOCK)
    out_f32 = jax.block_until_ready(out_f32)
    np.testing.assert_allclose(np.asarray(out_f32), np.asarray(ref), rtol=1e-3, atol=1e-3)

    # bf16-operand path (f32 accumulation): ~2x MXU throughput, looser tolerance
    out_bf16, _ = fwd(x, A, folded_bf16, BATCH_BLOCK)
    out_bf16 = jax.block_until_ready(out_bf16)
    np.testing.assert_allclose(np.asarray(out_bf16), np.asarray(ref), rtol=5e-2, atol=5e-2)

    assert out_f32.shape == (N, Cout, T, V)
    assert A_out.shape == (K, V, V)

    print("KERNEL_OK")
</pallas_src>

<mosaic_0001>
module attributes {stable_mosaic.version = 11 : i64} {
  func.func @kernel(%arg0: i32, %arg1: i32, %arg2: memref<1x1x8x160xf32, #tpu.memory_space<vmem>>, %arg3: memref<2x160x160xf32, #tpu.memory_space<vmem>>, %arg4: memref<8x8xf32, #tpu.memory_space<vmem>>, %arg5: memref<8x160xf32, #tpu.memory_space<vmem>>, %arg6: memref<8x24xf32, #tpu.memory_space<vmem>>, %arg7: memref<8x4xf32, #tpu.memory_space<vmem>>, %arg8: memref<8x128xf32, #tpu.memory_space<vmem>>, %arg9: memref<1x16x128xf32, #tpu.memory_space<vmem>>) attributes {dimension_semantics = [#tpu.dimension_semantics<parallel>, #tpu.dimension_semantics<parallel>], iteration_bounds = array<i64: 2, 2>, scalar_prefetch = 0 : i64, scratch_operands = 0 : i64, tpu.core_type = #tpu.core_type<tc>, window_params = [{transform_indices = @transform_0, window_bounds = array<i64: 1, 1, 8, 160>}, {pipeline_mode = #tpu.pipeline_mode<synchronous>, transform_indices = @transform_1, window_bounds = array<i64: 2, 160, 160>}, {pipeline_mode = #tpu.pipeline_mode<synchronous>, transform_indices = @transform_2, window_bounds = array<i64: 8, 8>}, {pipeline_mode = #tpu.pipeline_mode<synchronous>, transform_indices = @transform_3, window_bounds = array<i64: 8, 160>}, {pipeline_mode = #tpu.pipeline_mode<synchronous>, transform_indices = @transform_4, window_bounds = array<i64: 8, 24>}, {pipeline_mode = #tpu.pipeline_mode<synchronous>, transform_indices = @transform_5, window_bounds = array<i64: 8, 4>}, {pipeline_mode = #tpu.pipeline_mode<synchronous>, transform_indices = @transform_6, window_bounds = array<i64: 8, 128>}, {transform_indices = @transform_7, window_bounds = array<i64: 1, 16, 128>}]} {
    %c0 = arith.constant 0 : index
    %c0_0 = arith.constant 0 : index
    %0 = vector.load %arg4[%c0, %c0_0] : memref<8x8xf32, #tpu.memory_space<vmem>>, vector<8x8xf32>
    %c0_1 = arith.constant 0 : index
    %c0_2 = arith.constant 0 : index
    %c0_3 = arith.constant 0 : index
    %c0_4 = arith.constant 0 : index
    %1 = vector.load %arg2[%c0_1, %c0_2, %c0_3, %c0_4] : memref<1x1x8x160xf32, #tpu.memory_space<vmem>>, vector<1x1x8x160xf32>
    %2 = vector.shape_cast %1 : vector<1x1x8x160xf32> to vector<8x160xf32>
    %c0_5 = arith.constant 0 : index
    %c0_6 = arith.constant 0 : index
    %c0_7 = arith.constant 0 : index
    %3 = vector.load %arg3[%c0_5, %c0_6, %c0_7] : memref<2x160x160xf32, #tpu.memory_space<vmem>>, vector<1x160x160xf32>
    %4 = vector.shape_cast %3 : vector<1x160x160xf32> to vector<160x160xf32>
    %cst = arith.constant dense<0.000000e+00> : vector<8x160xf32>
    %5 = tpu.matmul %2, %4, %cst {dimension_numbers = #tpu.dot_dimension_numbers<[1], [0], [0], [1], [0, 0, 1, 1], [], []>} : vector<8x160xf32>, vector<160x160xf32>, vector<8x160xf32> -> vector<8x160xf32>
    %6 = vector.shape_cast %5 : vector<8x160xf32> to vector<2x4x160xf32>
    %c1 = arith.constant 1 : index
    %c0_8 = arith.constant 0 : index
    %c0_9 = arith.constant 0 : index
    %7 = vector.load %arg3[%c1, %c0_8, %c0_9] : memref<2x160x160xf32, #tpu.memory_space<vmem>>, vector<1x160x160xf32>
    %8 = vector.shape_cast %7 : vector<1x160x160xf32> to vector<160x160xf32>
    %cst_10 = arith.constant dense<0.000000e+00> : vector<8x160xf32>
    %9 = tpu.matmul %2, %8, %cst_10 {dimension_numbers = #tpu.dot_dimension_numbers<[1], [0], [0], [1], [0, 0, 1, 1], [], []>} : vector<8x160xf32>, vector<160x160xf32>, vector<8x160xf32> -> vector<8x160xf32>
    %10 = vector.shape_cast %9 : vector<8x160xf32> to vector<2x4x160xf32>
    %11 = tpu.concatenate %6, %10 in 1 : vector<2x4x160xf32>, vector<2x4x160xf32> -> vector<2x8x160xf32>
    %12 = vector.shape_cast %0 : vector<8x8xf32> to vector<1x8x8xf32>
    %13 = vector.broadcast %12 : vector<1x8x8xf32> to vector<2x8x8xf32>
    "tpu.trace_start"() <{level = 10 : i32, message = "bod,bdl->bol"}> : () -> ()
    %cst_11 = arith.constant dense<0.000000e+00> : vector<2x8x160xf32>
    %14 = tpu.matmul %13, %11, %cst_11 {dimension_numbers = #tpu.dot_dimension_numbers<[2], [1], [1], [2], [0, 0, 0, 1, 1, 2], [0], [0]>} : vector<2x8x8xf32>, vector<2x8x160xf32>, vector<2x8x160xf32> -> vector<2x8x160xf32>
    "tpu.trace_stop"() : () -> ()
    %c0_12 = arith.constant 0 : index
    %c0_13 = arith.constant 0 : index
    %15 = vector.load %arg5[%c0_12, %c0_13] : memref<8x160xf32, #tpu.memory_space<vmem>>, vector<8x160xf32>
    %16 = vector.shape_cast %15 : vector<8x160xf32> to vector<1x8x160xf32>
    %17 = vector.broadcast %16 : vector<1x8x160xf32> to vector<2x8x160xf32>
    %18 = arith.addf %14, %17 : vector<2x8x160xf32>
    %cst_14 = arith.constant 0.000000e+00 : f32
    %19 = vector.broadcast %cst_14 : f32 to vector<2x8x160xf32>
    %20 = arith.maximumf %18, %19 : vector<2x8x160xf32>
    %21 = tpu.iota {dimensions = array<i32: 2>} : vector<2x8x160xi32>
    %c128_i32 = arith.constant 128 : i32
    %22 = arith.muli %arg1, %c128_i32 : i32
    %c16_i32 = arith.constant 16 : i32
    %23 = arith.subi %c16_i32, %22 : i32
    %c128_i32_15 = arith.constant 128 : i32
    %24 = arith.muli %arg1, %c128_i32_15 : i32
    %c272_i32 = arith.constant 272 : i32
    %25 = arith.subi %c272_i32, %24 : i32
    %26 = vector.broadcast %23 : i32 to vector<2x8x160xi32>
    %27 = arith.cmpi sge, %21, %26 : vector<2x8x160xi32>
    %28 = vector.broadcast %25 : i32 to vector<2x8x160xi32>
    %29 = arith.cmpi slt, %21, %28 : vector<2x8x160xi32>
    %30 = arith.andi %27, %29 : vector<2x8x160xi1>
    %cst_16 = arith.constant 0.000000e+00 : f32
    %31 = vector.broadcast %cst_16 : f32 to vector<2x8x160xf32>
    %32 = arith.select %30, %20, %31 : vector<2x8x160xi1>, vector<2x8x160xf32>
    %33 = vector.extract_strided_slice %32 {offsets = [0, 0, 0], sizes = [2, 8, 128], strides = [1, 1, 1]} : vector<2x8x160xf32> to vector<2x8x128xf32>
    %34 = vector.extract_strided_slice %32 {offsets = [0, 0, 16], sizes = [2, 8, 128], strides = [1, 1, 1]} : vector<2x8x160xf32> to vector<2x8x128xf32>
    %35 = vector.extract_strided_slice %32 {offsets = [0, 0, 32], sizes = [2, 8, 128], strides = [1, 1, 1]} : vector<2x8x160xf32> to vector<2x8x128xf32>
    %36 = tpu.concatenate %33, %34, %35 in 1 : vector<2x8x128xf32>, vector<2x8x128xf32>, vector<2x8x128xf32> -> vector<2x24x128xf32>
    %c0_17 = arith.constant 0 : index
    %c0_18 = arith.constant 0 : index
    %37 = vector.load %arg6[%c0_17, %c0_18] : memref<8x24xf32, #tpu.memory_space<vmem>>, vector<8x24xf32>
    %38 = vector.shape_cast %37 : vector<8x24xf32> to vector<1x8x24xf32>
    %39 = vector.broadcast %38 : vector<1x8x24xf32> to vector<2x8x24xf32>
    "tpu.trace_start"() <{level = 10 : i32, message = "bod,bdl->bol"}> : () -> ()
    %cst_19 = arith.constant dense<0.000000e+00> : vector<2x8x128xf32>
    %40 = tpu.matmul %39, %36, %cst_19 {dimension_numbers = #tpu.dot_dimension_numbers<[2], [1], [1], [2], [0, 0, 0, 1, 1, 2], [0], [0]>} : vector<2x8x24xf32>, vector<2x24x128xf32>, vector<2x8x128xf32> -> vector<2x8x128xf32>
    "tpu.trace_stop"() : () -> ()
    %41 = vector.extract_strided_slice %2 {offsets = [0, 16], sizes = [8, 128], strides = [1, 1]} : vector<8x160xf32> to vector<8x128xf32>
    %42 = vector.shape_cast %41 : vector<8x128xf32> to vector<2x4x128xf32>
    %c0_20 = arith.constant 0 : index
    %c0_21 = arith.constant 0 : index
    %43 = vector.load %arg7[%c0_20, %c0_21] : memref<8x4xf32, #tpu.memory_space<vmem>>, vector<8x4xf32>
    %44 = vector.shape_cast %43 : vector<8x4xf32> to vector<1x8x4xf32>
    %45 = vector.broadcast %44 : vector<1x8x4xf32> to vector<2x8x4xf32>
    "tpu.trace_start"() <{level = 10 : i32, message = "bod,bdl->bol"}> : () -> ()
    %cst_22 = arith.constant dense<0.000000e+00> : vector<2x8x128xf32>
    %46 = tpu.matmul %45, %42, %cst_22 {dimension_numbers = #tpu.dot_dimension_numbers<[2], [1], [1], [2], [0, 0, 0, 1, 1, 2], [0], [0]>} : vector<2x8x4xf32>, vector<2x4x128xf32>, vector<2x8x128xf32> -> vector<2x8x128xf32>
    "tpu.trace_stop"() : () -> ()
    %47 = arith.addf %40, %46 : vector<2x8x128xf32>
    %c0_23 = arith.constant 0 : index
    %c0_24 = arith.constant 0 : index
    %48 = vector.load %arg8[%c0_23, %c0_24] : memref<8x128xf32, #tpu.memory_space<vmem>>, vector<8x128xf32>
    %49 = vector.shape_cast %48 : vector<8x128xf32> to vector<1x8x128xf32>
    %50 = vector.broadcast %49 : vector<1x8x128xf32> to vector<2x8x128xf32>
    %51 = arith.addf %47, %50 : vector<2x8x128xf32>
    %cst_25 = arith.constant 0.000000e+00 : f32
    %52 = vector.broadcast %cst_25 : f32 to vector<2x8x128xf32>
    %53 = arith.maximumf %51, %52 : vector<2x8x128xf32>
    %54 = vector.shape_cast %53 : vector<2x8x128xf32> to vector<16x128xf32>
    %c0_26 = arith.constant 0 : index
    %c0_27 = arith.constant 0 : index
    %c0_28 = arith.constant 0 : index
    %55 = vector.load %arg9[%c0_26, %c0_27, %c0_28] : memref<1x16x128xf32, #tpu.memory_space<vmem>>, vector<1x16x128xf32>
    %56 = vector.shape_cast %55 : vector<1x16x128xf32> to vector<16x128xf32>
    %57 = vector.shape_cast %54 : vector<16x128xf32> to vector<1x16x128xf32>
    tpu.vector_store %arg9[%c0_26, %c0_27, %c0_28], %57 {strides = array<i32>} : memref<1x16x128xf32, #tpu.memory_space<vmem>>, vector<1x16x128xf32>,
    return
  }
  func.func @transform_0(%arg0: i32, %arg1: i32) -> (i32, i32, i32, i32) {
    %c0_i32 = arith.constant 0 : i32
    %c0_i32_0 = arith.constant 0 : i32
    %c0_i32_1 = arith.constant 0 : i32
    return %arg0, %arg1, %c0_i32, %c0_i32_0 : i32, i32, i32, i32
  }
  func.func @transform_1(%arg0: i32, %arg1: i32) -> (i32, i32, i32) {
    %c0_i32 = arith.constant 0 : i32
    %c0_i32_0 = arith.constant 0 : i32
    %c0_i32_1 = arith.constant 0 : i32
    %c0_i32_2 = arith.constant 0 : i32
    return %c0_i32, %c0_i32_0, %c0_i32_1 : i32, i32, i32
  }
  func.func @transform_2(%arg0: i32, %arg1: i32) -> (i32, i32) {
    %c0_i32 = arith.constant 0 : i32
    %c0_i32_0 = arith.constant 0 : i32
    %c0_i32_1 = arith.constant 0 : i32
    return %c0_i32, %c0_i32_0 : i32, i32
  }
  func.func @transform_3(%arg0: i32, %arg1: i32) -> (i32, i32) {
    %c0_i32 = arith.constant 0 : i32
    %c0_i32_0 = arith.constant 0 : i32
    %c0_i32_1 = arith.constant 0 : i32
    return %c0_i32, %c0_i32_0 : i32, i32
  }
  func.func @transform_4(%arg0: i32, %arg1: i32) -> (i32, i32) {
    %c0_i32 = arith.constant 0 : i32
    %c0_i32_0 = arith.constant 0 : i32
    %c0_i32_1 = arith.constant 0 : i32
    return %c0_i32, %c0_i32_0 : i32, i32
  }
  func.func @transform_5(%arg0: i32, %arg1: i32) -> (i32, i32) {
    %c0_i32 = arith.constant 0 : i32
    %c0_i32_0 = arith.constant 0 : i32
    %c0_i32_1 = arith.constant 0 : i32
    return %c0_i32, %c0_i32_0 : i32, i32
  }
  func.func @transform_6(%arg0: i32, %arg1: i32) -> (i32, i32) {
    %c0_i32 = arith.constant 0 : i32
    %c0_i32_0 = arith.constant 0 : i32
    %c0_i32_1 = arith.constant 0 : i32
    return %c0_i32, %c0_i32_0 : i32, i32
  }
  func.func @transform_7(%arg0: i32, %arg1: i32) -> (i32, i32, i32) {
    %c0_i32 = arith.constant 0 : i32
    %c0_i32_0 = arith.constant 0 : i32
    return %arg0, %c0_i32, %arg1 : i32, i32, i32
  }
}

</mosaic_0001>

<bundles_post_ra>
// kernel: st_gcn_block_forward.1
= control target key start
LH: loop header
LB: loop body
LE: loop exit
PB: predicated region body
PF: predicated region fallthrough
CT: control target
= control target key end

     0   :  { %12 = vsyncpa [#allocation3], 0  ;;  %s1608_s24 = smov 0   ;;  %s1610_s25 = smov 0   ;;  %s1858_s0 = inlined_call_operand.vmem [shape: f32[2,2,8,160], index: 0, kind: input, shape index: {}]   ;;  %s1859_s1 = inlined_call_operand.hbm [shape: f32[2,160,160], index: 1, kind: input, shape index: {}]   ;;  %s1860_s2 = inlined_call_operand.vmem [shape: f32[8,8], index: 2, kind: input, shape index: {}]   ;;  %s1861_s3 = inlined_call_operand.vmem [shape: f32[8,160], index: 3, kind: input, shape index: {}]   ;;  %s1862_s4 = inlined_call_operand.vmem [shape: f32[8,24], index: 4, kind: input, shape index: {}]   ;;  %s1863_s5 = inlined_call_operand.vmem [shape: f32[8,4], index: 5, kind: input, shape index: {}]   ;;  %s1864_s6 = inlined_call_operand.vmem [shape: f32[8,128], index: 6, kind: input, shape index: {}]   ;;  %s1865_s7 = inlined_call_operand.vmem [shape: f32[2,16,256], index: 7, kind: output, shape index: {}]  }
   0x1   :  { %s1612_s26 = smov 0   ;;  %s1614_s27 = smov 0  }
   0x2   :  { %s1616_s28 = smov 0   ;;  %s1618_s29 = smov 0  }
   0x3   :  { %s1620_s30 = smov 0  }
   0x4 LB: > { %s1219_s8 = sadd.s32 4294967295, %s1557_s30   ;;  %s27_s9 = sadd.s32 1, %s1549_s28  ;;  %s1557_s30 = sphi %s1620_s30, %s18_s30   ;;  %s1553_s29 = sphi %s1618_s29, %s1896_s29   ;;  %s1549_s28 = sphi %s1616_s28, %s1895_s28   ;;  %s1545_s27 = sphi %s1614_s27, %s1894_s27   ;;  %s1541_s26 = sphi %s1612_s26, %s1893_s26   ;;  %s1537_s25 = sphi %s1610_s25, %s1892_s25   ;;  %s1533_s24 = sphi %s1608_s24, %s1891_s24  }
   0x5   : > { %p28_p0 = scmp.ge.s32.totalorder %s27_s9, 2  ;;  %s30_s10 = sadd.s32 1, %s1553_s29 }
   0x6   : > { %s193_s11 = sadd.s32 1, %s1537_s25  ;;  %p203_p1 = scmp.ne.s32.totalorder %s1537_s25, %s1533_s24 }
   0x7   : > { %s1898_s9 = smov (%p28_p0, %s27_s9), 0  ;;  %s1900_s10 = smov (!%p28_p0, %s30_s10), %s1553_s29 }
   0x8   : > { %s189_s12 = ssub.s32 %s1549_s28, %s1898_s9  ;;  %p204_p2 = scmp.eq.s32.totalorder %s1219_s8, 3 }
   0x9   : > { %p32_p3 = scmp.ge.s32.totalorder %s1900_s10, 2  ;;  %p1221_p4 = scmp.ge.s32.totalorder %s1557_s30, 1 }
   0xa   : > { %p1655_p5 = por %p204_p2, %p203_p1  ;;  %p217_p6 = scmp.lt.s32.totalorder %s1557_s30, 5 }
   0xb   : > { %s1902_s10 = smov (%p32_p3, %s1900_s10), 0  ;;  %p1668_p8 = scmp.eq.s32.totalorder %s1219_s8, 0 }
   0xc   : > { %s1870_s13 = scalar_select %p1655_p5, 1, 0 }
   0xd   : > { %1871 = sst [smem:[#allocation6_spill]] %s1902_s10  ;;  %p1662_p7 = pnand %p1221_p4, %p217_p6 }
   0xe   : > { %s188_s15 = ssub.s32 %s1553_s29, %s1902_s10  ;;  %s1559_s18 = smov [#allocation2]  }
   0xf   : > { %s1872_s14 = scalar_select %p1662_p7, 1, 0 }
  0x10   : > { %s1873_s16 = scalar_select %p1668_p8, 1, 0 }
  0x11   : > { %s190_s17 = sor.u32 %s189_s12, %s188_s15  ;;  %p1386_p9 = pneg %p1662_p7 }
  0x12   : > { %p191_p10 = scmp.eq.s32.totalorder %s190_s17, 0  ;;  %s229_s19 = sshll.u32 %s1559_s18, 4  ;;  %s230_s19 = int_to_ptr.vmem [resolvable:$true] %s229_s19 }
  0x13   : > { %p1676_p11 = pnand %p1668_p8, %p1386_p9  ;;  %s1471_s8 = scalar_lea.hbm %s1859_s1, 10240 }
  0x14   : > { %s1681_s21 = scalar_select %p191_p10, %s1537_s25, %s193_s11  }
  0x15   : > { %p1472_p12 = scmp.ne.s32.totalorder %s1859_s1, %s1471_s8  ;;  %p1473_p13 = pneg %p1676_p11 }
  0x16   : > { %p1478_p2 = scmp.lt.u32.totalorder %s1471_s8, %s1859_s1 }
  0x17   : > { %p1474_p0 = pnand %p1473_p13, %p1472_p12 }
  0x19   : > { %p1475_p1 = pneg %p1474_p0 }
  0x1b   : > { %p1480_p3 = pnand %p1478_p2, %p1475_p1 }
  0x1d   : > { %1483 = shalt.err (!%p1480_p3)
}
  0x1e   : > { %s1484_s11 = scalar_lea.vmem %s230_s19, 10240  ;;  %p1492_p10 = scmp.lt.s32.totalorder %s230_s19, %s230_s19 }
  0x1f   : > { %p1485_p4 = scmp.ne.s32.totalorder %s230_s19, %s1484_s11  ;;  %p1493_p5 = scmp.lt.s32.totalorder %s1484_s11, %s1484_s11 }
  0x21   : > { %p1487_p6 = pnand %p1485_p4, %p1473_p13  ;;  %p1494_p8 = por %p1493_p5, %p1492_p10 }
  0x23   : > { %p1488_p9 = pneg %p1487_p6 }
  0x25   : > { %p1495_p7 = pnand %p1494_p8, %p1488_p9 }
  0x27   : > { %1498 = shalt.err (!%p1495_p7)
}
  0x28   : > { %s1560_s10 = smov 256   ;;  %s1561_s18 = smov 16  }
  0x29   : > { %1389 = dma.hbm_to_vmem [thread:$0]  (!%p1676_p11), %s1859_s1, 10240, %s230_s19, [#allocation3], %s1560_s10, %s1560_s10, %s1561_s18  }
  0x2a   : > { %p1875_p12 = scmp.ne.s32.totalorder %s1872_s14, 0 }
  0x2b   : > { %p1876_p0 = scmp.ne.s32.totalorder (!%p1875_p12), %s1873_s16, 0 }
  0x2c   : > { %272 = sbr.rel (%p1875_p12) target bundleno = 891 (0x37b), region = 48 }
  0x33   : > { %1528 = dma.done.wait (%p1876_p0), [#allocation3], 10240  }
  0x34   : > { %1530 = vsyncadd (%p1876_p0), [#allocation3], 4294957056  ;;  %v320_v0 = vld [vmem:[#allocation2 + $0x8] sm:$0xff]  ;;  %v322_v1 = vld [vmem:[#allocation2 + $0x18] sm:$0xff]  ;;  %p307_p5 = scmp.lt.s32.totalorder %s1545_s27, 1  ;;  %p309_p7 = scmp.lt.s32.totalorder %s1541_s26, 1 }
  0x35   : > { %v442_v2 = vld [vmem:[#allocation2 + $0x148] sm:$0xff]  ;;  %v1294_v3 = vpack.c.bf16 %v322_v1, %v320_v0  ;;  %v444_v4 = vld [vmem:[#allocation2 + $0x158] sm:$0xff]  ;;  %v319_v5 = vld [vmem:[#allocation2] sm:$0xff]  ;;  %vm359_vm0 = vcmask 261120   ;;  %s1563_s10 = smov 112   ;;  %vm566_vm1 = vcmask 1043456  }
  0x36   : > { %v321_v6 = vld [vmem:[#allocation2 + $0x10] sm:$0xff]  ;;  %v1334_v7 = vpack.c.bf16 %v444_v4, %v442_v2  ;;  %v441_v9 = vld [vmem:[#allocation2 + $0x140] sm:$0xff]  ;;  %v324_v11 = vld [vmem:[#allocation2 + $0x28] sm:$0xff]  ;;  %s1710_s14 = scalar_select %p307_p5, %s1545_s27, 1  ;;  %vm573_vm2 = vcmask 64512   ;;  %vm753_vm3 = vcmask 916480  }
  0x37   : > { %v1296_v8 = vpack.c.bf16 %v321_v6, %v319_v5  ;;  %v443_v10 = vld [vmem:[#allocation2 + $0x150] sm:$0xff]  ;;  %1295 = vmatprep.subr.bf16.mxu0 %v1294_v3  ;;  %v326_v13 = vld [vmem:[#allocation2 + $0x38] sm:$0xff]  ;;  %v446_v14 = vld [vmem:[#allocation2 + $0x168] sm:$0xff]  ;;  %s1715_s16 = scalar_select %p309_p7, %s1541_s26, 1  ;;  %vm1564_vm8 = vmmov 0   ;;  %vm782_vm9 = vcmask 31744  }
  0x38   : > { %v1336_v12 = vpack.c.bf16 %v443_v10, %v441_v9  ;;  %v448_v15 = vld [vmem:[#allocation2 + $0x178] sm:$0xff]  ;;  %1335 = vmatprep.subr.bf16.mxu1 %v1334_v7  ;;  %v1298_v16 = vpack.c.bf16 %v326_v13, %v324_v11  ;;  %v323_v18 = vld [vmem:[#allocation2 + $0x20] sm:$0xff]  ;;  %v325_v19 = vld [vmem:[#allocation2 + $0x30] sm:$0xff]  ;;  %s1228_s20 = sshll.u32 %s1710_s14, 2  ;;  %s1238_s23 = sshll.u32 %s1541_s26, 7  ;;  %vm1567_vm12 = vmmov 1  }
  0x39   : > { %1297 = vmatpush1.bf16.msra.mxu0 %v1296_v8  ;;  %v1338_v17 = vpack.c.bf16 %v448_v15, %v446_v14  ;;  %v445_v20 = vld [vmem:[#allocation2 + $0x160] sm:$0xff]  ;;  %v1300_v21 = vpack.c.bf16 %v325_v19, %v323_v18  ;;  %v447_v22 = vld [vmem:[#allocation2 + $0x170] sm:$0xff]  ;;  %v328_v23 = vld [vmem:[#allocation2 + $0x48] sm:$0xff]  ;;  %s1227_s19 = sshll.u32 %s1715_s16, 1  ;;  %s727_s14 = ssub.s32 16, %s1238_s23  ;;  %vm766_vm14 = vcmask 785408  }
  0x3a   : > { %1337 = vmatpush1.bf16.msra.mxu1 %v1336_v12  ;;  %v330_v24 = vld [vmem:[#allocation2 + $0x58] sm:$0xff]  ;;  %1299 = vmatprep.subr.bf16.mxu0 %v1298_v16  ;;  %v1340_v25 = vpack.c.bf16 %v447_v22, %v445_v20  ;;  %v450_v27 = vld [vmem:[#allocation2 + $0x188] sm:$0xff]  ;;  %v327_v29 = vld [vmem:[#allocation2 + $0x40] sm:$0xff]  ;;  %s313_s8 = sadd.s32 %s1228_s20, %s1227_s19  ;;  %s728_s16 = ssub.s32 272, %s1238_s23  ;;  %vm936_vm15 = vcmask 195584  }
  0x3b   : > { %1339 = vmatprep.subr.bf16.mxu1 %v1338_v17  ;;  %v1302_v26 = vpack.c.bf16 %v330_v24, %v328_v23  ;;  %v452_v28 = vld [vmem:[#allocation2 + $0x198] sm:$0xff]  ;;  %v329_v31 = vld [vmem:[#allocation2 + $0x50] sm:$0xff]  ;;  %v449_v32 = vld [vmem:[#allocation2 + $0x180] sm:$0xff]  ;;  %s1229_s12 = sshll.u32 %s313_s8, 3  ;;  %s304_s22 = sand.u32 1, %s1533_s24  }
  0x3c   : > { %v1342_v30 = vpack.c.bf16 %v452_v28, %v450_v27  ;;  %v451_v33 = vld [vmem:[#allocation2 + $0x190] sm:$0xff]  ;;  %v1304_v34 = vpack.c.bf16 %v329_v31, %v327_v29  ;;  %v332_v35 = vld [vmem:[#allocation2 + $0x68] sm:$0xff]  ;;  %v334_v36 = vld [vmem:[#allocation2 + $0x78] sm:$0xff]  ;;  %s1722_s11 = scalar_lea.vmem %s1858_s0, %s1229_s12  ;;  %p1889_p8 = scmp.ne.s32.totalorder %s1870_s13, 0 }
  0x3d   : > { %1301 = vmatpush1.bf16.msra.mxu0 %v1300_v21  ;;  %v454_v37 = vld [vmem:[#allocation2 + $0x1a8] sm:$0xff]  ;;  %v1344_v38 = vpack.c.bf16 %v451_v33, %v449_v32  ;;  %v1306_v39 = vpack.c.bf16 %v334_v36, %v332_v35  ;;  %v456_v40 = vld [vmem:[#allocation2 + $0x1b8] sm:$0xff]  ;;  %v331_v41 = vld [vmem:[#allocation2 + $0x60] sm:$0xff]  ;;  %s1250_s24 = sshll.u32 (%p1889_p8), %s1545_s27, 2 }
  0x3e   : > { %1341 = vmatpush1.bf16.msra.mxu1 %v1340_v25  ;;  %1303 = vmatprep.subr.bf16.mxu0 %v1302_v26  ;;  %v333_v42 = vld [vmem:[#allocation2 + $0x70] sm:$0xff]  ;;  %v1346_v43 = vpack.c.bf16 %v456_v40, %v454_v37  ;;  %v453_v44 = vld [vmem:[#allocation2 + $0x1a0] sm:$0xff]  ;;  %v336_v46 = vld [vmem:[#allocation2 + $0x88] sm:$0xff]  ;;  %s1095_s20 = sadd.s32 (%p1889_p8), %s1541_s26, %s1250_s24 }
  0x3f   : > { %1343 = vmatprep.subr.bf16.mxu1 %v1342_v30  ;;  %v455_v45 = vld [vmem:[#allocation2 + $0x1b0] sm:$0xff]  ;;  %v338_v47 = vld [vmem:[#allocation2 + $0x98] sm:$0xff]  ;;  %v458_v48 = vld [vmem:[#allocation2 + $0x1c8] sm:$0xff]  ;;  %v1308_v50 = vpack.c.bf16 %v333_v42, %v331_v41  ;;  %s1251_s8 = sshll.u32 (%p1889_p8), %s1095_s20, 3 }
  0x40   : > { %v460_v49 = vld [vmem:[#allocation2 + $0x1d8] sm:$0xff]  ;;  %v1348_v51 = vpack.c.bf16 %v455_v45, %v453_v44  ;;  %v1310_v52 = vpack.c.bf16 %v338_v47, %v336_v46  ;;  %v335_v53 = vld [vmem:[#allocation2 + $0x80] sm:$0xff]  ;;  %v337_v54 = vld [vmem:[#allocation2 + $0x90] sm:$0xff]  ;;  %s1097_s17 = scalar_lea.vmem (%p1889_p8), %s1865_s7, %s1251_s8 }
  0x41   : > { %1305 = vmatpush1.bf16.msra.mxu0 %v1304_v34  ;;  %v457_v55 = vld [vmem:[#allocation2 + $0x1c0] sm:$0xff]  ;;  %v1350_v56 = vpack.c.bf16 %v460_v49, %v458_v48  ;;  %v459_v57 = vld [vmem:[#allocation2 + $0x1d0] sm:$0xff]  ;;  %v340_v58 = vld [vmem:[#allocation2 + $0xa8] sm:$0xff]  ;;  %v1312_v62 = vpack.c.bf16 %v337_v54, %v335_v53 }
  0x42   : > { %1345 = vmatpush1.bf16.msra.mxu1 %v1344_v38  ;;  %1307 = vmatprep.subr.bf16.mxu0 %v1306_v39  ;;  %v342_v59 = vld [vmem:[#allocation2 + $0xb8] sm:$0xff]  ;;  %v462_v60 = vld [vmem:[#allocation2 + $0x1e8] sm:$0xff]  ;;  %v1352_v63 = vpack.c.bf16 %v459_v57, %v457_v55  ;;  %v339_v1 = vld [vmem:[#allocation2 + $0xa0] sm:$0xff] }
  0x43   : > { %1347 = vmatprep.subr.bf16.mxu1 %v1346_v43  ;;  %v464_v61 = vld [vmem:[#allocation2 + $0x1f8] sm:$0xff]  ;;  %v1314_v0 = vpack.c.bf16 %v342_v59, %v340_v58  ;;  %v341_v2 = vld [vmem:[#allocation2 + $0xb0] sm:$0xff]  ;;  %v461_v3 = vld [vmem:[#allocation2 + $0x1e0] sm:$0xff]  ;;  %v1562_v58 = vmov 0.0  }
  0x44   : > { %v1354_v4 = vpack.c.bf16 %v464_v61, %v462_v60  ;;  %v463_v5 = vld [vmem:[#allocation2 + $0x1f0] sm:$0xff]  ;;  %v344_v6 = vld [vmem:[#allocation2 + $0xc8] sm:$0xff]  ;;  %v346_v7 = vld [vmem:[#allocation2 + $0xd8] sm:$0xff]  ;;  %v1316_v10 = vpack.c.bf16 %v341_v2, %v339_v1 }
  0x45   : > { %1309 = vmatpush1.bf16.msra.mxu0 %v1308_v50  ;;  %v466_v8 = vld [vmem:[#allocation2 + $0x208] sm:$0xff]  ;;  %v468_v9 = vld [vmem:[#allocation2 + $0x218] sm:$0xff]  ;;  %v1356_v11 = vpack.c.bf16 %v463_v5, %v461_v3  ;;  %v1318_v12 = vpack.c.bf16 %v346_v7, %v344_v6  ;;  %v343_v13 = vld [vmem:[#allocation2 + $0xc0] sm:$0xff] }
  0x46   : > { %1349 = vmatpush1.bf16.msra.mxu1 %v1348_v51  ;;  %1311 = vmatprep.subr.bf16.mxu0 %v1310_v52  ;;  %v345_v14 = vld [vmem:[#allocation2 + $0xd0] sm:$0xff]  ;;  %v465_v15 = vld [vmem:[#allocation2 + $0x200] sm:$0xff]  ;;  %v1358_v16 = vpack.c.bf16 %v468_v9, %v466_v8  ;;  %v348_v18 = vld [vmem:[#allocation2 + $0xe8] sm:$0xff] }
  0x47   : > { %1351 = vmatprep.subr.bf16.mxu1 %v1350_v56  ;;  %v467_v17 = vld [vmem:[#allocation2 + $0x210] sm:$0xff]  ;;  %v350_v19 = vld [vmem:[#allocation2 + $0xf8] sm:$0xff]  ;;  %v470_v20 = vld [vmem:[#allocation2 + $0x228] sm:$0xff]  ;;  %v1320_v22 = vpack.c.bf16 %v345_v14, %v343_v13 }
  0x48   : > { %v472_v21 = vld [vmem:[#allocation2 + $0x238] sm:$0xff]  ;;  %v347_v23 = vld [vmem:[#allocation2 + $0xe0] sm:$0xff]  ;;  %v1360_v24 = vpack.c.bf16 %v467_v17, %v465_v15  ;;  %v1322_v25 = vpack.c.bf16 %v350_v19, %v348_v18  ;;  %v349_v26 = vld [vmem:[#allocation2 + $0xf0] sm:$0xff]  ;;  %v723_v19 = vlaneseq }
  0x49   : > { %1313 = vmatpush1.bf16.msra.mxu0 %v1312_v62  ;;  %v469_v27 = vld [vmem:[#allocation2 + $0x220] sm:$0xff]  ;;  %v471_v28 = vld [vmem:[#allocation2 + $0x230] sm:$0xff]  ;;  %v1362_v29 = vpack.c.bf16 %v472_v21, %v470_v20  ;;  %v352_v30 = vld [vmem:[#allocation2 + $0x108] sm:$0xff]  ;;  %v1324_v35 = vpack.c.bf16 %v349_v26, %v347_v23 }
  0x4a   : > { %1353 = vmatpush1.bf16.msra.mxu1 %v1352_v63  ;;  %1315 = vmatprep.subr.bf16.mxu0 %v1314_v0  ;;  %v354_v31 = vld [vmem:[#allocation2 + $0x118] sm:$0xff]  ;;  %v1725_v32 = vld [vmem:[%s1722_s11 + $0x8] sm:$0xff]  ;;  %v1364_v36 = vpack.c.bf16 %v471_v28, %v469_v27  ;;  %v351_v38 = vld [vmem:[#allocation2 + $0x100] sm:$0xff] }
  0x4b   : > { %1355 = vmatprep.subr.bf16.mxu1 %v1354_v4  ;;  %v474_v33 = vld [vmem:[#allocation2 + $0x248] sm:$0xff]  ;;  %v476_v34 = vld [vmem:[#allocation2 + $0x258] sm:$0xff]  ;;  %1230 = vmatprep.mubr.msk.f32.mxu0 %vm359_vm0, %v1725_v32  ;;  %v1326_v37 = vpack.c.bf16 %v354_v31, %v352_v30  ;;  %v353_v39 = vld [vmem:[#allocation2 + $0x110] sm:$0xff]  ;;  %v1239_v60 = vcombine.low %v1725_v32, %v1725_v32  ;;  %v1242_v14 = vcombine.high %v1725_v32, %v1725_v32 }
  0x4c   : > { %1231 = vmatprep.mubr.msk.f32.mxu1 %vm359_vm0, %v1725_v32  ;;  %v473_v40 = vld [vmem:[#allocation2 + $0x240] sm:$0xff]  ;;  %v1366_v41 = vpack.c.bf16 %v476_v34, %v474_v33  ;;  %v475_v42 = vld [vmem:[#allocation2 + $0x250] sm:$0xff]  ;;  %v356_v43 = vld [vmem:[#allocation2 + $0x128] sm:$0xff]  ;;  %v1328_v47 = vpack.c.bf16 %v353_v39, %v351_v38 }
  0x4d   : > { %1317 = vmatpush1.bf16.msra.mxu0 %v1316_v10  ;;  %v358_v44 = vld [vmem:[#allocation2 + $0x138] sm:$0xff]  ;;  %v478_v45 = vld [vmem:[#allocation2 + $0x268] sm:$0xff]  ;;  %v1368_v48 = vpack.c.bf16 %v475_v42, %v473_v40  ;;  %v355_v50 = vld [vmem:[#allocation2 + $0x120] sm:$0xff] }
  0x4e   : > { %1357 = vmatpush1.bf16.msra.mxu1 %v1356_v11  ;;  %1319 = vmatprep.subr.bf16.mxu0 %v1318_v12  ;;  %v480_v46 = vld [vmem:[#allocation2 + $0x278] sm:$0xff]  ;;  %v1330_v49 = vpack.c.bf16 %v358_v44, %v356_v43  ;;  %v357_v51 = vld [vmem:[#allocation2 + $0x130] sm:$0xff]  ;;  %v477_v53 = vld [vmem:[#allocation2 + $0x260] sm:$0xff] }
  0x4f   : > { %1359 = vmatprep.subr.bf16.mxu1 %v1358_v16  ;;  %v1370_v52 = vpack.c.bf16 %v480_v46, %v478_v45  ;;  %v479_v54 = vld [vmem:[#allocation2 + $0x270] sm:$0xff]  ;;  %v1332_v55 = vpack.c.bf16 %v357_v51, %v355_v50  ;;  %v317_v57 = vld [vmem:[%s1722_s11] sm:$0xff]  ;;  %v572_v30 = vld [vmem:[%s1861_s3 + $0x8] sm:$0xff]  ;;  %s1566_s11 = smov 96  }
  0x50   : > { %v1372_v56 = vpack.c.bf16 %v479_v54, %v477_v53  ;;  %v773_v59 = vcombine.low %v317_v57, %v1725_v32  ;;  %v316_v13 = vld [vmem:[%s1860_s2] sm:$0xff]  ;;  %v774_v15 = vcombine.high %v317_v57, %v1725_v32 }
  0x51   : > { %1321 = vmatpush1.bf16.msra.mxu0 %v1320_v22  ;;  %v724_v22 = vand.u32 127, %v723_v19  ;;  %v571_v27 = vld [vmem:[%s1861_s3] sm:$0xff] }
  0x52   : > { %1361 = vmatpush1.bf16.msra.mxu1 %v1360_v24  ;;  %1323 = vmatprep.subr.bf16.mxu0 %v1322_v25  ;;  %v729_v24 = vstv %s727_s14  ;;  %v732_v25 = vstv %s728_s16  ;;  %s1226_s16 = sshll.u32 %s304_s22, 4 }
  0x53   : > { %1363 = vmatprep.subr.bf16.mxu1 %v1362_v29  ;;  %777 = vrot.lane.b32.xlu1 %v773_v59, %s1563_s10  ;;  %v725_v26 = vadd.s32 128, %v724_v22  ;;  %vm1761_vm4 = vcmp.ge.s32.totalorder %v724_v22, %v729_v24  ;;  %vm1765_vm5 = vcmp.lt.s32.totalorder %v724_v22, %v732_v25  ;;  %s306_s19 = scalar_lea.vmem [#allocation4], %s1226_s16 }
  0x54   : > { %859 = vrot.lane.b32.xlu0 %v774_v15, %s1563_s10  ;;  %vm1791_vm10 = vmand %vm1761_vm4, %vm1765_vm5 }
  0x55   : > { %1325 = vmatpush1.bf16.msra.mxu0 %v1324_v35  ;;  %vm1772_vm6 = vcmp.ge.s32.totalorder %v725_v26, %v729_v24  ;;  %vm1776_vm7 = vcmp.lt.s32.totalorder %v725_v26, %v732_v25  ;;  %v1565_v35 = vmov 0.0|0.0   ;;  %vm1812_vm13 = vmpackc.low %vm1567_vm12, %vm1791_vm10 }
  0x56   : > { %1365 = vmatpush1.bf16.msra.mxu1 %v1364_v36  ;;  %1327 = vmatprep.subr.bf16.mxu0 %v1326_v37  ;;  %v775_v36 = vld [vmem:[%s1863_s5] sm:$0xff]  ;;  %vm736_vm11 = vmand %vm1772_vm6, %vm1776_vm7 }
  0x57   : > { %1367 = vmatprep.subr.bf16.mxu1 %v1366_v41  ;;  %779 = vrot.lane.b32.xlu1 %v1239_v60, %s1563_s10 }
  0x59   : > { %1329 = vmatpush1.bf16.msra.mxu0 %v1328_v47 }
  0x5a   : > { %1369 = vmatpush1.bf16.msra.mxu1 %v1368_v48  ;;  %1331 = vmatprep.subr.bf16.mxu0 %v1330_v49 }
  0x5b   : > { %1371 = vmatprep.subr.bf16.mxu1 %v1370_v52  ;;  %861 = vrot.lane.b32.xlu1 %v1242_v14, %s1563_s10  ;;  %v1080_v14 = vld [vmem:[%s1864_s6] sm:$0xff] }
  0x5d   : > { %1333 = vmatpush1.bf16.msra.mxu0 %v1332_v55 }
  0x5e   : > { %1373 = vmatpush1.bf16.msra.mxu1 %v1372_v56 }
  0x60   : > { %428 = vmatmul.mubr.f32.vlgmr.msra.gmra.mrb[0].mxu0 %v317_v57 }
  0x61   : > { %546 = vmatmul.mubr.f32.vlgmr.msra.gmra.mrb[0].mxu1 %v317_v57  ;;  %641 = vmatprep.mubr.f32.mxu0 %v1562_v58 }
  0x62   : > { %712 = vmatprep.mubr.f32.mxu1 %v1562_v58 }
  0xc5   : > { %v778_v16 = vpop.permute.xlu1 %777 }
  0xc6   : > { %v860_v21 = vpop.permute.xlu0 %859 }
  0xc9   : > { %v780_v17 = vpop.permute.xlu1 %779 }
  0xca   : > { %v781_v18 = vsel %vm753_vm3, %v778_v16, %v780_v17 }
  0xcd   : > { %v862_v20 = vpop.permute.xlu1 %861 }
  0xce   : > { %v863_v23 = vsel %vm753_vm3, %v860_v21, %v862_v20 }
 0x133   : > { %v429_v61 = vpop.f32.mrb[0].mxu0 }
 0x134   : > { %v547_v62 = vpop.f32.mrb[0].mxu1  ;;  %v431_v63 = vpop.f32.mrb[1].mxu0 }
 0x135   : > { %v1234_v0 = vcombine.low %v547_v62, %v547_v62  ;;  %v1235_v1 = vcombine.high %v547_v62, %v547_v62  ;;  %v436_v2 = vcombine.low %v429_v61, %v431_v63  ;;  %v437_v3 = vcombine.high %v429_v61, %v431_v63  ;;  %v549_v4 = vpop.f32.mrb[1].mxu1 }
 0x136   : > { %v1232_v5 = vcombine.low %v431_v63, %v431_v63  ;;  %v1233_v6 = vcombine.high %v431_v63, %v431_v63  ;;  %v554_v7 = vcombine.low %v547_v62, %v549_v4  ;;  %v555_v8 = vcombine.high %v547_v62, %v549_v4  ;;  %v771_v4 = vld [vmem:[%s1862_s4] sm:$0xff] }
 0x137   : > { %v567_v9 = vsel %vm566_vm1, %v436_v2, %v1234_v0  ;;  %v569_v10 = vsel %vm566_vm1, %v437_v3, %v1235_v1 }
 0x138   : > { %v568_v11 = vsel %vm566_vm1, %v1232_v5, %v554_v7  ;;  %v570_v12 = vsel %vm566_vm1, %v1233_v6, %v555_v8 }
 0x139   : > { %577 = vmatprep.subr.mxu0 %v568_v11  ;;  %648 = vmatprep.subr.mxu1 %v570_v12 }
 0x13a   : > { %578 = vmatpush1.msra.mxu0 %v567_v9  ;;  %649 = vmatpush1.msra.mxu1 %v569_v10 }
 0x13b   : > { %1236 = vmatmul.mubr.msk.f32.vlgmr.msra.gmra.mrb[2].mxu0 %vm573_vm2, %v316_v13  ;;  %1237 = vmatmul.mubr.msk.f32.vlgmr.msra.gmra.mrb[2].mxu1 %vm573_vm2, %v316_v13 }
 0x13c   : > { %1266 = vmatprep.subr.mxu0 %v1562_v58  ;;  %1271 = vmatprep.subr.mxu1 %v1562_v58 }
 0x13d   : > { %1267 = vmatpush3.msk.msra.mxu0 %vm566_vm1, %v781_v18  ;;  %1272 = vmatpush3.msk.msra.mxu1 %vm566_vm1, %v863_v23 }
 0x13e   : > { %1268 = vmatprep.mubr.msk.f32.mxu0 %vm1564_vm8, %v1562_v58  ;;  %1374 = vmatprep.subr.bf16.mxu0 %v1565_v35 }
 0x13f   : > { %1269 = vmatmul.mubr.msk.f32.vlgmr.msra.gmra.mrb[4].mxu0 %vm782_vm9, %v775_v36  ;;  %1273 = vmatprep.mubr.msk.f32.mxu1 %vm1564_vm8, %v1562_v58 }
 0x140   : > { %1378 = vmatprep.subr.bf16.mxu1 %v1565_v35  ;;  %1274 = vmatmul.mubr.msk.f32.vlgmr.msra.gmra.mrb[4].mxu1 %vm782_vm9, %v775_v36 }
 0x141   : > { %1282 = vmatprep.mubr.msk.f32.mxu0 %vm1564_vm8, %v1562_v58  ;;  %1291 = vmatprep.mubr.msk.f32.mxu1 %vm1564_vm8, %v1562_v58 }
 0x20e   : > { %v643_v31 = vpop.f32.mrb[2].mxu0  ;;  %v714_v32 = vpop.f32.mrb[2].mxu1 }
 0x20f   : > { %v644_v37 = vadd.f32 %v643_v31, %v571_v27  ;;  %v645_v38 = vpop.f32.mrb[3].mxu0  ;;  %v715_v39 = vadd.f32 %v714_v32, %v571_v27  ;;  %v716_v40 = vpop.f32.mrb[3].mxu1 }
 0x210   : > { %v646_v42 = vadd.f32 %v645_v38, %v572_v30  ;;  %v717_v43 = vadd.f32 %v716_v40, %v572_v30 }
 0x211   : > { %v719_v44 = vmax.f32 %v644_v37, 0.0  ;;  %v721_v45 = vmax.f32 %v715_v39, 0.0 }
 0x212   : > { %v720_v46 = vmax.f32 %v646_v42, 0.0  ;;  %v722_v47 = vmax.f32 %v717_v43, 0.0  ;;  %v854_v9 = vpop.f32.mrb[4].mxu0 }
 0x213   : > { %v737_v48 = vsel %vm1791_vm10, %v719_v44, 0.0  ;;  %v739_v49 = vsel %vm1791_vm10, %v721_v45, 0.0  ;;  %v1270_v10 = vpop.f32.mrb[5].mxu0  ;;  %v932_v11 = vpop.f32.mrb[4].mxu1 }
 0x214   : > { %v738_v50 = vsel %vm736_vm11, %v720_v46, 0.0  ;;  %v740_v51 = vsel %vm736_vm11, %v722_v47, 0.0  ;;  %v1275_v12 = vpop.f32.mrb[5].mxu1 }
 0x215   : > { %760 = vrot.lane.b32.xlu1 %v738_v50, %s1566_s11  ;;  %v1457_v52 = vpack.i.bf16 %v738_v50, %v737_v48  ;;  %v1462_v53 = vpack.i.bf16 %v740_v51, %v739_v49 }
 0x217   : > { %1458 = vrot.lane.b32.xlu0 %v1457_v52, %s1563_s10 }
 0x219   : > { %764 = vrot.lane.b32.xlu1 %v740_v51, %s1566_s11 }
 0x21b   : > { %1463 = vrot.lane.b32.xlu0 %v1462_v53, %s1563_s10 }
 0x21f   : > { %758 = vrot.lane.b32.xlu0 %v737_v48, %s1566_s11 }
 0x223   : > { %762 = vrot.lane.b32.xlu0 %v739_v49, %s1566_s11 }
 0x287   : > { %v761_v0 = vpop.permute.xlu1 %760 }
 0x289   : > { %v1459_v54 = vpop.permute.xlu0 %1458 }
 0x28a   : > { %v1461_v55 = vunpack.i.h.bf16 %v1459_v54  ;;  %v1460_v56 = vunpack.i.l.bf16 %v1459_v54 }
 0x28b   : > { %v765_v6 = vpop.permute.xlu1 %764 }
 0x28c   : > { %v754_v57 = vsel %vm753_vm3, %v1460_v56, %v1461_v55 }
 0x28d   : > { %v1375_v60 = vpack.c.bf16 %v754_v57, %v719_v44  ;;  %v1464_v61 = vpop.permute.xlu0 %1463 }
 0x28e   : > { %v1466_v62 = vunpack.i.h.bf16 %v1464_v61  ;;  %v1465_v63 = vunpack.i.l.bf16 %v1464_v61 }
 0x28f   : > { %1377 = vmatpush3.bf16.msk.msra.mxu0 %vm1812_vm13, %v1375_v60 }
 0x290   : > { %v755_v1 = vsel %vm753_vm3, %v1465_v63, %v1466_v62  ;;  %1280 = vmatprep.subr.mxu0 %v1562_v58 }
 0x291   : > { %v1379_v2 = vpack.c.bf16 %v755_v1, %v721_v45  ;;  %v759_v3 = vpop.permute.xlu0 %758 }
 0x292   : > { %v767_v5 = vsel %vm766_vm14, %v759_v3, %v761_v0 }
 0x293   : > { %1281 = vmatpush3.msra.mxu0 %v767_v5  ;;  %1381 = vmatpush3.bf16.msk.msra.mxu1 %vm1812_vm13, %v1379_v2 }
 0x294   : > { %1283 = vmatmul.mubr.msk.f32.vlgmr.msra.gmra.mrb[6].mxu0 %vm936_vm15, %v771_v4  ;;  %1289 = vmatprep.subr.mxu1 %v1562_v58 }
 0x295   : > { %v763_v7 = vpop.permute.xlu0 %762 }
 0x296   : > { %v768_v8 = vsel %vm766_vm14, %v763_v7, %v765_v6 }
 0x297   : > { %1290 = vmatpush3.msra.mxu1 %v768_v8 }
 0x298   : > { %1292 = vmatmul.mubr.msk.f32.vlgmr.msra.gmra.mrb[6].mxu1 %vm936_vm15, %v771_v4 }
 0x367   : > { %v1006_v13 = vpop.f32.mrb[6].mxu0 }
 0x368   : > { %v1007_v15 = vadd.f32 %v1006_v13, %v854_v9  ;;  %v1284_v16 = vpop.f32.mrb[7].mxu0 }
 0x36a   : > { %v1081_v17 = vadd.f32 %v1080_v14, %v1007_v15 }
 0x36b   : > { %v1076_v58 = vpop.f32.mrb[6].mxu1 }
 0x36c   : > { %v1083_v18 = vmax.f32 %v1081_v17, 0.0  ;;  %v1077_v19 = vadd.f32 %v1076_v58, %v932_v11  ;;  %v1293_v20 = vpop.f32.mrb[7].mxu1  ;;  %1093 = sbr.rel (!%p1889_p8) target bundleno = 891 (0x37b), region = 56 }
 0x36e   : > { %1085 = vst [vmem:[%s306_s19] sm:$0xff] %v1083_v18  ;;  %v1082_v21 = vadd.f32 %v1080_v14, %v1077_v19 }
 0x370   : > { %v1084_v22 = vmax.f32 %v1082_v21, 0.0 }
 0x372   : > { %1086 = vst [vmem:[%s306_s19 + $0x8] sm:$0xff] %v1084_v22 }
 0x375   : > { %v1127_v23 = vld [vmem:[%s306_s19] sm:$0xff] }
 0x376   : > { %1128 = vst [vmem:[%s1097_s17] sm:$0xff] %v1127_v23 }
 0x379   : > { %v1129_v24 = vld [vmem:[%s306_s19 + $0x8] sm:$0xff] }
 0x37a   : > { %1130 = vst [vmem:[%s1097_s17 + $0x10] sm:$0xff] %v1129_v24 }
 0x37b PF: > { %s18_s30 = sadd.s32 1, %s1557_s30   ;;  %s1890_s13 = sld [smem:[#allocation6_spill]] }
 0x37c   : > { %p15_p11 = scmp.ge.s32.totalorder %s18_s30, 6   ;;  %s1891_s24 = smov %s1537_s25 }
 0x37d   : > { %s1892_s25 = smov %s1681_s21  ;;  %s1893_s26 = smov %s1549_s28 }
 0x37e   : > { %s1894_s27 = smov %s1553_s29  ;;  %s1895_s28 = smov %s1898_s9 }
 0x37f   :  { %17 = sbr.rel (!%p15_p11) target bundleno = 4 (0x4), region = 122 }
 0x381   : > { %s1896_s29 = smov %s1890_s13 }
 0x386   :  { %1146 = vsyncpa [#allocation3], 1 }
 0x387   :  { %1148 = vsyncpa [#allocation3 + $0x1], 1 }

</bundles_post_ra>
